<compile_context>
chip_gen: v7x
topology: tpu7x:2x2x1
jax: 0.10.0
libtpu: 0.0.40
codegen_flags: <defaults>
</compile_context>

<pallas_src>
import jax
import jax.numpy as jnp
from jax.experimental import pallas as pl
from jax.experimental.pallas import tpu as pltpu

N_HEADS = 6      # 3 mu heads + 3 std heads
N_MU = 3         # rows 0..2 -> tanh (mu), rows 3..5 -> 2*softplus (std)
HEAD_PAD = 8     # head rows padded to one sublane group
LANE = 128       # batch tile granularity (batch sits on the lane axis)


def _round_up(n, m):
    return ((n + m - 1) // m) * m


def _cdiv(a, b):
    return -(-a // b)


def policy_kernel(xt_ref, w1t_ref, b1_ref, w2t_ref, b2_ref, wht_ref, bh_ref,
                  out_ref):
    # shared MLP, transposed: h1 = relu(W1^T @ x^T + b1) : (hidden, TB)
    h1 = jnp.maximum(
        jnp.dot(w1t_ref[...], xt_ref[...], preferred_element_type=jnp.float32)
        + b1_ref[...],
        0.0,
    )
    # h2 = relu(W2^T @ h1 + b2) : (hidden, TB)
    h2 = jnp.maximum(
        jnp.dot(w2t_ref[...], h1.astype(jnp.bfloat16),
                preferred_element_type=jnp.float32)
        + b2_ref[...],
        0.0,
    )
    # all 6 heads fused in one (8, hidden) @ (hidden, TB) matmul -> (8, TB)
    z = jnp.dot(wht_ref[...], h2.astype(jnp.bfloat16),
                preferred_element_type=jnp.float32) + bh_ref[...]
    # rows 0..2 -> tanh (mu heads); rows 3.. -> 2 * softplus (std heads)
    row = jax.lax.broadcasted_iota(jnp.int32, z.shape, dimension=0)
    out_ref[...] = jnp.where(row < N_MU, jnp.tanh(z), 2.0 * jax.nn.softplus(z))


def policy_net_forward(x, params, *, block_b=2048, use_pallas=True):
    """x: (B, state_dim) f32. Returns dict matching the PyTorch forward."""
    B, state_dim = x.shape
    w1, b1, w2, b2, wh, bh = params
    hidden = w1.shape[1]

    if not use_pallas:
        # TODO(synk): at tiny batches (O(10) rows) fixed launch/DMA overhead
        # dominates ~16 MXU cycles of work; callers on the hot path should let
        # XLA fuse this forward instead of invoking the Pallas kernel.
        return reference_forward(x, params)

    # --- tile sizing (batch is the 128-lane axis) ---
    n_tiles = _cdiv(B, block_b)
    tb = _round_up(_cdiv(B, n_tiles), LANE)
    if n_tiles == 1 and tb >= 2 * LANE:
        # ensure >= 2 grid steps so v7x can shard the batch axis over both TCs
        n_tiles = 2
        tb = _round_up(_cdiv(B, n_tiles), LANE)
    b_pad = n_tiles * tb

    # --- transposed, padded, bf16 matmul operands (biases stay f32) ---
    xt = jnp.pad(x, ((0, b_pad - B), (0, 0))).T.astype(jnp.bfloat16)   # (S, Bp)
    w1t = w1.T.astype(jnp.bfloat16)                                    # (H, S)
    w2t = w2.T.astype(jnp.bfloat16)                                    # (H, H)
    wht = jnp.pad(wh, ((0, 0), (0, HEAD_PAD - N_HEADS))).T.astype(jnp.bfloat16)  # (8, H)
    b1t = b1.T                                                         # (H, 1)
    b2t = b2.T                                                         # (H, 1)
    bht = jnp.pad(bh, ((0, 0), (0, HEAD_PAD - N_HEADS))).T             # (8, 1)

    flops = 2 * b_pad * (state_dim * hidden + hidden * hidden + hidden * HEAD_PAD)
    transcendentals = 3 * b_pad * HEAD_PAD       # tanh + exp/log of softplus
    bytes_accessed = (
        xt.size * 2 + w1t.size * 2 + w2t.size * 2 + wht.size * 2
        + (2 * hidden + HEAD_PAD) * 4            # biases
        + HEAD_PAD * b_pad * 4                   # output
    )

    out = pl.pallas_call(
        policy_kernel,
        out_shape=jax.ShapeDtypeStruct((HEAD_PAD, b_pad), jnp.float32),
        grid=(n_tiles,),
        in_specs=[
            # batch-tiled activations (lane axis = batch)
            pl.BlockSpec((state_dim, tb), lambda i: (0, i)),
            # VMEM-resident weights / biases (constant index_map -> fetched once)
            pl.BlockSpec((hidden, state_dim), lambda i: (0, 0)),
            pl.BlockSpec((hidden, 1), lambda i: (0, 0)),
            pl.BlockSpec((hidden, hidden), lambda i: (0, 0)),
            pl.BlockSpec((hidden, 1), lambda i: (0, 0)),
            pl.BlockSpec((HEAD_PAD, hidden), lambda i: (0, 0)),
            pl.BlockSpec((HEAD_PAD, 1), lambda i: (0, 0)),
        ],
        out_specs=pl.BlockSpec((HEAD_PAD, tb), lambda i: (0, i)),
        compiler_params=pltpu.CompilerParams(
            dimension_semantics=("parallel",)),
        cost_estimate=pl.CostEstimate(
            flops=int(flops),
            transcendentals=int(transcendentals),
            bytes_accessed=int(bytes_accessed)),
    )(xt, w1t, b1t, w2t, b2t, wht, bht)

    heads = out[:N_HEADS, :B]                     # (6, B)
    kmax_mu, kmin_mu, pmax_mu = (heads[0][:, None], heads[1][:, None],
                                 heads[2][:, None])
    kmax_std, kmin_std, pmax_std = (heads[3][:, None], heads[4][:, None],
                                    heads[5][:, None])
    return {
        "kmax": (kmax_mu, kmax_std),
        "kmin": (kmin_mu, kmin_std),
        "pmax": (pmax_mu, pmax_std),
    }


def init_params(key, state_dim, hidden_dim):
    """Deterministic synthetic parameters (shapes per PolicyNet.__init__).

    Stored as (in_features, out_features) so the forward is x @ W + b
    (i.e. PyTorch nn.Linear weights pre-transposed)."""
    ks = jax.random.split(key, 6)
    scale1 = 1.0 / jnp.sqrt(state_dim)
    scale2 = 1.0 / jnp.sqrt(hidden_dim)
    # shared: Linear(state_dim, hidden), Linear(hidden, hidden)
    w1 = jax.random.normal(ks[0], (state_dim, hidden_dim), jnp.float32) * scale1
    b1 = jax.random.normal(ks[1], (1, hidden_dim), jnp.float32) * scale1
    w2 = jax.random.normal(ks[2], (hidden_dim, hidden_dim), jnp.float32) * scale2
    b2 = jax.random.normal(ks[3], (1, hidden_dim), jnp.float32) * scale2
    # heads packed as columns: [kmax_mu, kmin_mu, pmax_mu, kmax_std, kmin_std, pmax_std]
    wh = jax.random.normal(ks[4], (hidden_dim, N_HEADS), jnp.float32) * scale2
    bh = jax.random.normal(ks[5], (1, N_HEADS), jnp.float32) * scale2
    return (w1, b1, w2, b2, wh, bh)


def reference_forward(x, params):
    """Pure-JAX reference mirroring the PyTorch module (same bf16 operand cast)."""
    w1, b1, w2, b2, wh, bh = params
    bf = jnp.bfloat16
    h = jnp.maximum(
        jnp.dot(x.astype(bf), w1.astype(bf), preferred_element_type=jnp.float32)
        + b1, 0.0)
    h = jnp.maximum(
        jnp.dot(h.astype(bf), w2.astype(bf), preferred_element_type=jnp.float32)
        + b2, 0.0)
    z = jnp.dot(h.astype(bf), wh.astype(bf),
                preferred_element_type=jnp.float32) + bh
    mu = jnp.tanh(z[:, :N_MU])
    std = 2.0 * jax.nn.softplus(z[:, N_MU:])
    return {
        "kmax": (mu[:, 0:1], std[:, 0:1]),
        "kmin": (mu[:, 1:2], std[:, 1:2]),
        "pmax": (mu[:, 2:3], std[:, 2:3]),
    }


if __name__ == "__main__":
    key = jax.random.PRNGKey(0)
    k_x, k_p = jax.random.split(key)

    batch = 16
    state_dim = 16
    hidden_dim = 32

    x = jax.random.normal(k_x, (batch, state_dim), jnp.float32)
    params = init_params(k_p, state_dim, hidden_dim)

    out = policy_net_forward(x, params)
    jax.block_until_ready(out)

    # sanity check against the pure-JAX reference
    ref = reference_forward(x, params)
    for name in ("kmax", "kmin", "pmax"):
        for got, want in zip(out[name], ref[name]):
            assert got.shape == (batch, 1)
            assert jnp.allclose(got, want, atol=2e-3, rtol=2e-3), (
                name, jnp.max(jnp.abs(got - want)))

    print("KERNEL_OK")
</pallas_src>

<mosaic_0001>
module attributes {stable_mosaic.version = 11 : i64} {
  func.func @policy_kernel(%arg0: i32, %arg1: memref<16x128xbf16, #tpu.memory_space<vmem>>, %arg2: memref<32x16xbf16, #tpu.memory_space<vmem>>, %arg3: memref<32x1xf32, #tpu.memory_space<vmem>>, %arg4: memref<32x32xbf16, #tpu.memory_space<vmem>>, %arg5: memref<32x1xf32, #tpu.memory_space<vmem>>, %arg6: memref<8x32xbf16, #tpu.memory_space<vmem>>, %arg7: memref<8x1xf32, #tpu.memory_space<vmem>>, %arg8: memref<8x128xf32, #tpu.memory_space<vmem>>) attributes {dimension_semantics = [#tpu.dimension_semantics<parallel>], iteration_bounds = array<i64: 1>, scalar_prefetch = 0 : i64, scratch_operands = 0 : i64, tpu.core_type = #tpu.core_type<tc>, window_params = [{transform_indices = @transform_0, window_bounds = array<i64: 16, 128>}, {pipeline_mode = #tpu.pipeline_mode<synchronous>, transform_indices = @transform_1, window_bounds = array<i64: 32, 16>}, {pipeline_mode = #tpu.pipeline_mode<synchronous>, transform_indices = @transform_2, window_bounds = array<i64: 32, 1>}, {pipeline_mode = #tpu.pipeline_mode<synchronous>, transform_indices = @transform_3, window_bounds = array<i64: 32, 32>}, {pipeline_mode = #tpu.pipeline_mode<synchronous>, transform_indices = @transform_4, window_bounds = array<i64: 32, 1>}, {pipeline_mode = #tpu.pipeline_mode<synchronous>, transform_indices = @transform_5, window_bounds = array<i64: 8, 32>}, {pipeline_mode = #tpu.pipeline_mode<synchronous>, transform_indices = @transform_6, window_bounds = array<i64: 8, 1>}, {transform_indices = @transform_7, window_bounds = array<i64: 8, 128>}]} {
    %c0 = arith.constant 0 : index
    %c0_0 = arith.constant 0 : index
    %0 = vector.load %arg2[%c0, %c0_0] : memref<32x16xbf16, #tpu.memory_space<vmem>>, vector<32x16xbf16>
    %c0_1 = arith.constant 0 : index
    %c0_2 = arith.constant 0 : index
    %1 = vector.load %arg1[%c0_1, %c0_2] : memref<16x128xbf16, #tpu.memory_space<vmem>>, vector<16x128xbf16>
    %cst = arith.constant dense<0.000000e+00> : vector<32x128xf32>
    %2 = tpu.matmul %0, %1, %cst {dimension_numbers = #tpu.dot_dimension_numbers<[1], [0], [0], [1], [0, 0, 1, 1], [], []>} : vector<32x16xbf16>, vector<16x128xbf16>, vector<32x128xf32> -> vector<32x128xf32>
    %c0_3 = arith.constant 0 : index
    %c0_4 = arith.constant 0 : index
    %3 = vector.load %arg3[%c0_3, %c0_4] : memref<32x1xf32, #tpu.memory_space<vmem>>, vector<32x1xf32>
    %4 = vector.broadcast %3 : vector<32x1xf32> to vector<32x128xf32>
    %5 = arith.addf %2, %4 : vector<32x128xf32>
    %cst_5 = arith.constant 0.000000e+00 : f32
    %6 = vector.broadcast %cst_5 : f32 to vector<32x128xf32>
    %7 = arith.maximumf %5, %6 : vector<32x128xf32>
    %c0_6 = arith.constant 0 : index
    %c0_7 = arith.constant 0 : index
    %8 = vector.load %arg4[%c0_6, %c0_7] : memref<32x32xbf16, #tpu.memory_space<vmem>>, vector<32x32xbf16>
    %9 = arith.truncf %7 : vector<32x128xf32> to vector<32x128xbf16>
    %cst_8 = arith.constant dense<0.000000e+00> : vector<32x128xf32>
    %10 = tpu.matmul %8, %9, %cst_8 {dimension_numbers = #tpu.dot_dimension_numbers<[1], [0], [0], [1], [0, 0, 1, 1], [], []>} : vector<32x32xbf16>, vector<32x128xbf16>, vector<32x128xf32> -> vector<32x128xf32>
    %c0_9 = arith.constant 0 : index
    %c0_10 = arith.constant 0 : index
    %11 = vector.load %arg5[%c0_9, %c0_10] : memref<32x1xf32, #tpu.memory_space<vmem>>, vector<32x1xf32>
    %12 = vector.broadcast %11 : vector<32x1xf32> to vector<32x128xf32>
    %13 = arith.addf %10, %12 : vector<32x128xf32>
    %cst_11 = arith.constant 0.000000e+00 : f32
    %14 = vector.broadcast %cst_11 : f32 to vector<32x128xf32>
    %15 = arith.maximumf %13, %14 : vector<32x128xf32>
    %c0_12 = arith.constant 0 : index
    %c0_13 = arith.constant 0 : index
    %16 = vector.load %arg6[%c0_12, %c0_13] : memref<8x32xbf16, #tpu.memory_space<vmem>>, vector<8x32xbf16>
    %17 = arith.truncf %15 : vector<32x128xf32> to vector<32x128xbf16>
    %cst_14 = arith.constant dense<0.000000e+00> : vector<8x128xf32>
    %18 = tpu.matmul %16, %17, %cst_14 {dimension_numbers = #tpu.dot_dimension_numbers<[1], [0], [0], [1], [0, 0, 1, 1], [], []>} : vector<8x32xbf16>, vector<32x128xbf16>, vector<8x128xf32> -> vector<8x128xf32>
    %c0_15 = arith.constant 0 : index
    %c0_16 = arith.constant 0 : index
    %19 = vector.load %arg7[%c0_15, %c0_16] : memref<8x1xf32, #tpu.memory_space<vmem>>, vector<8x1xf32>
    %20 = vector.broadcast %19 : vector<8x1xf32> to vector<8x128xf32>
    %21 = arith.addf %18, %20 : vector<8x128xf32>
    %22 = tpu.iota {dimensions = array<i32: 0>} : vector<8x128xi32>
    %c3_i32 = arith.constant 3 : i32
    %23 = vector.broadcast %c3_i32 : i32 to vector<8x128xi32>
    %24 = arith.cmpi slt, %22, %23 : vector<8x128xi32>
    %25 = math.tanh %21 : vector<8x128xf32>
    %cst_17 = arith.constant 0.000000e+00 : f32
    %26 = vector.broadcast %cst_17 : f32 to vector<8x128xf32>
    %27 = arith.maximumf %21, %26 : vector<8x128xf32>
    %28 = vector.broadcast %cst_17 : f32 to vector<8x128xf32>
    %29 = arith.subf %21, %28 : vector<8x128xf32>
    %30 = arith.cmpf one, %29, %29 : vector<8x128xf32>
    %31 = vector.broadcast %cst_17 : f32 to vector<8x128xf32>
    %32 = arith.addf %21, %31 : vector<8x128xf32>
    %33 = math.absf %29 : vector<8x128xf32>
    %cst_18 = arith.constant 0.000000e+00 : f32
    %34 = vector.broadcast %cst_18 : f32 to vector<8x128xf32>
    %35 = arith.subf %34, %33 : vector<8x128xf32>
    %36 = math.exp %35 : vector<8x128xf32>
    %37 = math.log1p %36 : vector<8x128xf32>
    %38 = arith.addf %27, %37 : vector<8x128xf32>
    %39 = arith.select %30, %32, %38 : vector<8x128xi1>, vector<8x128xf32>
    %cst_19 = arith.constant 2.000000e+00 : f32
    %40 = vector.broadcast %cst_19 : f32 to vector<8x128xf32>
    %41 = arith.mulf %40, %39 : vector<8x128xf32>
    %42 = arith.select %24, %25, %41 : vector<8x128xi1>, vector<8x128xf32>
    %c0_20 = arith.constant 0 : index
    %c0_21 = arith.constant 0 : index
    %43 = vector.load %arg8[%c0_20, %c0_21] : memref<8x128xf32, #tpu.memory_space<vmem>>, vector<8x128xf32>
    tpu.vector_store %arg8[%c0_20, %c0_21], %42 {strides = array<i32>} : memref<8x128xf32, #tpu.memory_space<vmem>>, vector<8x128xf32>,
    return
  }
  func.func @transform_0(%arg0: i32) -> (i32, i32) {
    %c0_i32 = arith.constant 0 : i32
    %c0_i32_0 = arith.constant 0 : i32
    return %c0_i32, %arg0 : i32, i32
  }
  func.func @transform_1(%arg0: i32) -> (i32, i32) {
    %c0_i32 = arith.constant 0 : i32
    %c0_i32_0 = arith.constant 0 : i32
    %c0_i32_1 = arith.constant 0 : i32
    return %c0_i32, %c0_i32_0 : i32, i32
  }
  func.func @transform_2(%arg0: i32) -> (i32, i32) {
    %c0_i32 = arith.constant 0 : i32
    %c0_i32_0 = arith.constant 0 : i32
    %c0_i32_1 = arith.constant 0 : i32
    return %c0_i32, %c0_i32_0 : i32, i32
  }
  func.func @transform_3(%arg0: i32) -> (i32, i32) {
    %c0_i32 = arith.constant 0 : i32
    %c0_i32_0 = arith.constant 0 : i32
    %c0_i32_1 = arith.constant 0 : i32
    return %c0_i32, %c0_i32_0 : i32, i32
  }
  func.func @transform_4(%arg0: i32) -> (i32, i32) {
    %c0_i32 = arith.constant 0 : i32
    %c0_i32_0 = arith.constant 0 : i32
    %c0_i32_1 = arith.constant 0 : i32
    return %c0_i32, %c0_i32_0 : i32, i32
  }
  func.func @transform_5(%arg0: i32) -> (i32, i32) {
    %c0_i32 = arith.constant 0 : i32
    %c0_i32_0 = arith.constant 0 : i32
    %c0_i32_1 = arith.constant 0 : i32
    return %c0_i32, %c0_i32_0 : i32, i32
  }
  func.func @transform_6(%arg0: i32) -> (i32, i32) {
    %c0_i32 = arith.constant 0 : i32
    %c0_i32_0 = arith.constant 0 : i32
    %c0_i32_1 = arith.constant 0 : i32
    return %c0_i32, %c0_i32_0 : i32, i32
  }
  func.func @transform_7(%arg0: i32) -> (i32, i32) {
    %c0_i32 = arith.constant 0 : i32
    %c0_i32_0 = arith.constant 0 : i32
    return %c0_i32, %arg0 : i32, i32
  }
}

</mosaic_0001>

<bundles_post_ra>
// kernel: tpu_custom_call.1
= control target key start
LH: loop header
LB: loop body
LE: loop exit
PB: predicated region body
PF: predicated region fallthrough
CT: control target
= control target key end

     0   :  { %vm74_vm0 = vcmask 130048   ;;  %v408_v3 = vmov 0   ;;  %s512_s0 = inlined_call_operand.vmem [shape: bf16[16,128], index: 0, kind: input, shape index: {}]   ;;  %s513_s1 = inlined_call_operand.vmem [shape: bf16[32,16], index: 1, kind: input, shape index: {}]   ;;  %s514_s2 = inlined_call_operand.vmem [shape: f32[32,1], index: 2, kind: input, shape index: {}]   ;;  %s515_s3 = inlined_call_operand.vmem [shape: bf16[32,32], index: 3, kind: input, shape index: {}]   ;;  %s516_s4 = inlined_call_operand.vmem [shape: f32[32,1], index: 4, kind: input, shape index: {}]   ;;  %s517_s5 = inlined_call_operand.vmem [shape: bf16[8,32], index: 5, kind: input, shape index: {}]   ;;  %s518_s6 = inlined_call_operand.vmem [shape: f32[8,1], index: 6, kind: input, shape index: {}]   ;;  %s519_s7 = inlined_call_operand.hbm [shape: f32[8,128], index: 7, kind: output, shape index: {}]  }
   0x1   :  { %v373_v0 = vld [vmem:[%s512_s0] sm:$0xff]   ;;  %v375_v2 = vld [vmem:[%s513_s1 + $0x8] sm:$0xff]   ;;  %371 = vset.pattern.permute.xlu0 %v408_v3  ;;  %v36_v5 = vld [vmem:[%s514_s2 + $0x10] sm:$0xff]  ;;  %372 = vset.pattern.permute.xlu1 %v408_v3 }
   0x2   :  { %v374_v1 = vld [vmem:[%s513_s1] sm:$0xff]   ;;  %345 = vmatprep.subr.bf16.mxu0 %v373_v0  ;;  %v35_v6 = vld [vmem:[%s514_s2 + $0x8] sm:$0xff]  ;;  %50 = vperm.xlu1 %372, %v36_v5   ;;  %v37_v7 = vld [vmem:[%s514_s2 + $0x18] sm:$0xff] }
   0x3   :  { %346 = vmatpush3.bf16.msra.mxu0 %v373_v0  ;;  %347 = vmatprep.mubr.msk.bf16.mxu0 %vm74_vm0, %v374_v1  ;;  %v34_v4 = vld [vmem:[%s514_s2] sm:$0xff] }
   0x4   :  { %40 = vperm.xlu0 %371, %v34_v4  }
   0x6   :  { %348 = vmatmul.mubr.msk.bf16.vlgmr.msra.gmra.mrb[0].mxu0 %vm74_vm0, %v375_v2 }
   0x7   :  { %12 = vsyncpa [#allocation3], 0  ;;  %v140_v8 = vld [vmem:[%s516_s4] sm:$0xff]  ;;  %55 = vperm.xlu1 %372, %v37_v7   ;;  %v141_v9 = vld [vmem:[%s516_s4 + $0x8] sm:$0xff]  ;;  %vm174_vm1 = vcmask 261120   ;;  %v409_v33 = vmov 0.0   ;;  %v286_v2 = vlaneseq }
   0x8   :  { %45 = vperm.xlu0 %371, %v35_v6   ;;  %v142_v10 = vld [vmem:[%s516_s4 + $0x10] sm:$0xff]  ;;  %v143_v11 = vld [vmem:[%s516_s4 + $0x18] sm:$0xff]  ;;  %v237_v12 = vld [vmem:[%s518_s6] sm:$0xff]  ;;  %359 = vmatprep.subr.bf16.mxu0 %v409_v33  ;;  %vm410_vm2 = vmmov 0  }
   0x9   :  { %v376_v13 = vld [vmem:[%s515_s3] sm:$0xff]   ;;  %v377_v32 = vld [vmem:[%s515_s3 + $0x8] sm:$0xff]   ;;  %363 = vmatprep.mubr.msk.bf16.mxu0 %vm410_vm2, %v409_v33 }
   0xa   :  { %355 = vmatprep.mubr.msk.bf16.mxu1 %vm174_vm1, %v376_v13  ;;  %v234_v52 = vld [vmem:[%s517_s5] sm:$0xf]  ;;  %s411_s5 = smov [#allocation2]  }
   0xb   :  { %151 = vperm.xlu1 %372, %v141_v9   ;;  %s317_s25 = sshll.u32 %s411_s5, 4  ;;  %s318_s25 = int_to_ptr.vmem [resolvable:$true] %s317_s25 }
   0xc   :  { %146 = vperm.xlu0 %371, %v140_v8   ;;  %v287_v8 = vshrl.u32 %v286_v2, 7  ;;  %s384_s26 = scalar_lea.vmem %s318_s25, 128  ;;  %p389_p1 = scmp.lt.s32.totalorder %s318_s25, %s318_s25 }
   0xd   :  { %p385_p0 = scmp.ne.s32.totalorder %s318_s25, %s384_s26  ;;  %p390_p2 = scmp.lt.s32.totalorder %s384_s26, %s384_s26 }
   0xe   :  { %vm288_vm5 = vcmp.lt.s32.totalorder %v287_v8, 3 }
   0xf   :  { %161 = vperm.xlu1 %372, %v143_v11   ;;  %p391_p3 = por %p390_p2, %p389_p1 }
  0x10   :  { %156 = vperm.xlu0 %371, %v142_v10  }
  0x11   :  { %p392_p4 = pnand %p391_p3, %p385_p0 }
  0x14   :  { %240 = vperm.xlu0 %371, %v237_v12  }
  0x81   :  { %v51_v14 = vpop.permute.xlu1 %50 }
  0x83   :  { %v41_v15 = vpop.permute.xlu0 %40 }
  0x86   :  { %v56_v19 = vpop.permute.xlu1 %55 }
  0x87   :  { %v46_v22 = vpop.permute.xlu0 %45 }
  0x8a   :  { %v152_v35 = vpop.permute.xlu1 %151 }
  0x8b   :  { %v147_v34 = vpop.permute.xlu0 %146 }
  0x8e   :  { %v162_v40 = vpop.permute.xlu1 %161 }
  0x8f   :  { %v157_v36 = vpop.permute.xlu0 %156 }
  0x93   :  { %v241_v53 = vpop.permute.xlu0 %240 }
  0xd9   :  { %v349_v16 = vpop.f32.mrb[0].mxu0 }
  0xda   :  { %v124_v17 = vadd.f32 %v349_v16, %v51_v14  ;;  %v115_v18 = vpop.f32.mrb[1].mxu0 }
  0xdb   :  { %v116_v20 = vadd.f32 %v115_v18, %v41_v15  ;;  %v350_v21 = vpop.f32.mrb[2].mxu0 }
  0xdc   :  { %v127_v23 = vadd.f32 %v350_v21, %v56_v19  ;;  %v118_v24 = vpop.f32.mrb[3].mxu0  ;;  %v132_v26 = vmax.f32 %v124_v17, 0.0 }
  0xdd   :  { %v119_v25 = vadd.f32 %v118_v24, %v46_v22  ;;  %v130_v28 = vmax.f32 %v116_v20, 0.0 }
  0xde   :  { %v133_v27 = vmax.f32 %v127_v23, 0.0 }
  0xdf   :  { %v131_v29 = vmax.f32 %v119_v25, 0.0 }
  0xe0   :  { %v139_v30 = vpack.c.bf16 %v133_v27, %v132_v26 }
  0xe1   :  { %v138_v31 = vpack.c.bf16 %v131_v29, %v130_v28 }
  0xe3   :  { %351 = vmatprep.subr.bf16.mxu1 %v138_v31 }
  0xe4   :  { %352 = vmatpush3.bf16.msra.mxu1 %v138_v31 }
  0xe5   :  { %353 = vmatprep.subr.bf16.mxu1 %v139_v30 }
  0xe8   :  { %354 = vmatpush3.bf16.msra.mxu1 %v139_v30 }
  0xeb   :  { %356 = vmatmul.mubr.msk.bf16.vlgmr.msra.gmra.mrb[0].mxu1 %vm174_vm1, %v377_v32 }
 0x1be   :  { %v357_v37 = vpop.f32.mrb[0].mxu1 }
 0x1bf   :  { %v224_v38 = vadd.f32 %v357_v37, %v157_v36  ;;  %v215_v39 = vpop.f32.mrb[1].mxu1 }
 0x1c0   :  { %v216_v41 = vadd.f32 %v215_v39, %v147_v34  ;;  %v358_v42 = vpop.f32.mrb[2].mxu1 }
 0x1c1   :  { %v227_v43 = vadd.f32 %v358_v42, %v162_v40  ;;  %v218_v44 = vpop.f32.mrb[3].mxu1  ;;  %v232_v46 = vmax.f32 %v224_v38, 0.0 }
 0x1c2   :  { %v219_v45 = vadd.f32 %v218_v44, %v152_v35  ;;  %v230_v48 = vmax.f32 %v216_v41, 0.0 }
 0x1c3   :  { %v233_v47 = vmax.f32 %v227_v43, 0.0 }
 0x1c4   :  { %v231_v49 = vmax.f32 %v219_v45, 0.0 }
 0x1c5   :  { %v236_v50 = vpack.c.bf16 %v233_v47, %v232_v46 }
 0x1c6   :  { %v235_v51 = vpack.c.bf16 %v231_v49, %v230_v48 }
 0x1c8   :  { %360 = vmatpush3.bf16.msra.mxu0 %v235_v51 }
 0x1c9   :  { %361 = vmatprep.subr.bf16.mxu0 %v409_v33 }
 0x1cc   :  { %362 = vmatpush3.bf16.msra.mxu0 %v236_v50 }
 0x1cf   :  { %364 = vmatmul.mubr.msk.bf16.vlgmr.msra.gmra.mrb[4].mxu0 %vm174_vm1, %v234_v52 }
 0x2a2   :  { %v280_v54 = vpop.f32.mrb[4].mxu0 }
 0x2a3   :  { %v281_v55 = vadd.f32 %v280_v54, %v241_v53  ;;  %v365_v56 = vpop.f32.mrb[5].mxu0 }
 0x2a4   :  { %v283_v57 = vpop.f32.mrb[6].mxu0 }
 0x2a5   :  { %v293_v58 = vand.u32 2147483647, %v281_v55  ;;  %v366_v59 = vpop.f32.mrb[7].mxu0  ;;  %v290_v7 = vmax.f32 %v281_v55, 0.0  ;;  %vm291_vm4 = vcmp.ne.f32.partialorder %v281_v55, %v281_v55 }
 0x2a7   :  { %v294_v60 = vsub.f32 0.0, %v293_v58 }
 0x2a9   :  { %v295_v61 = vmul.f32 1.442695, %v294_v60 }
 0x2ab   :  { %378 = vpow2.f32 %v295_v61 }
 0x2b5   :  { %v379_v62 = vpop.eup %378 }
 0x2b6   :  { %v297_v63 = vadd.f32 1.0, %v379_v62  ;;  %v300_v0 = vmul.f32 -0.5, %v379_v62  ;;  %v303_v3 = vand.u32 2147483647, %v379_v62 }
 0x2b8   :  { %380 = vlog2.f32 %v297_v63  ;;  %v301_v1 = vadd.f32 1.0, %v300_v0  ;;  %vm304_vm3 = vcmp.lt.f32.partialorder %v303_v3, 0.0004427343 }
 0x2b9   :  { %382 = vtanh.f32 %v281_v55 }
 0x2ba   :  { %v302_v6 = vmul.f32 %v379_v62, %v301_v1 }
 0x2c2   :  { %v381_v4 = vpop.eup %380 }
 0x2c3   :  { %v299_v5 = vmul.f32 0.6931472, %v381_v4  ;;  %v383_v13 = vpop.eup %382 }
 0x2c5   :  { %v305_v9 = vsel %vm304_vm3, %v302_v6, %v299_v5 }
 0x2c6   :  { %v306_v10 = vadd.f32 %v305_v9, %v290_v7 }
 0x2c8   :  { %v307_v11 = vsel %vm291_vm4, %v281_v55, %v306_v10 }
 0x2c9   :  { %v308_v12 = vmul.f32 2.0, %v307_v11 }
 0x2cb   :  { %v309_v14 = vsel %vm288_vm5, %v383_v13, %v308_v12 }
 0x2cc   :  { %310 = vst [vmem:[#allocation2] sm:$0xff] %v309_v14 }
 0x2cd   :  { %395 = shalt.err (!%p392_p4)
}
 0x2ce   :  { %s396_s29 = scalar_lea.hbm %s519_s7, 128 }
 0x2cf   :  { %p397_p5 = scmp.ne.s32.totalorder %s519_s7, %s396_s29  ;;  %p400_p6 = scmp.lt.u32.totalorder %s396_s29, %s519_s7 }
 0x2d1   :  { %p402_p7 = pnand %p400_p6, %p397_p5 }
 0x2d3   :  { %405 = shalt.err (!%p402_p7)
}
 0x2d4   :  { %320 = dma.vmem_to_hbm [thread:$0]  %s318_s25, 128, %s519_s7, [#allocation3]  }
 0x2d5   :  { %406 = dma.done.wait [#allocation3], 128  }
 0x2d6   :  { %407 = vsyncadd [#allocation3], 4294967168 }
 0x2d7   :  { %324 = vsyncpa [#allocation3], 1 }

</bundles_post_ra>
